<compile_context>
chip_gen: v6e
topology: v6e:2x2x1
jax: 0.10.0
libtpu: 0.0.40
codegen_flags: <defaults>
</compile_context>

<pallas_src>
import math
import numpy as np

import jax
import jax.numpy as jnp
from jax.experimental import pallas as pl
from jax.experimental.pallas import tpu as pltpu


# ---------------- small config implied by SAM.__init__ ----------------------
INP_SIZE = 16                          # inp_size
PATCH_SIZE = 2                         # encoder_mode['patch_size']
PROMPT_EMBED_DIM = 32                  # encoder_mode['prompt_embed_dim']
EMBED_SIZE = INP_SIZE // PATCH_SIZE    # image_embedding_size = 8
NUM_POS_FEATS = PROMPT_EMBED_DIM // 2  # 16
LOW_RES = 4 * EMBED_SIZE               # SAM low-res mask size = 32


# ---------------------------------------------------------------------------
# Host-side bilinear resize matrix (align_corners=False). Init-time only.
# ---------------------------------------------------------------------------
def _bilinear_matrix(out_size, in_size):
    i = np.arange(out_size, dtype=np.float64)
    src = (i + 0.5) * (in_size / out_size) - 0.5
    src = np.maximum(src, 0.0)                      # PyTorch clamps negatives
    i0 = np.minimum(np.floor(src).astype(np.int64), in_size - 1)
    i1 = np.minimum(i0 + 1, in_size - 1)
    frac = src - i0
    m = np.zeros((out_size, in_size), dtype=np.float64)
    m[np.arange(out_size), i0] += (1.0 - frac)
    m[np.arange(out_size), i1] += frac
    return m.astype(np.float32)


# ---------------------------------------------------------------------------
# Fused forward kernel: out = L @ mean_c(x) @ R + C  (single launch).
# L / R / C precompose: encoder stub (16->8), +interaction, decoder upsample
# (8->32) and postprocess_masks (32->16 crop + 16->16) — see __init__.
# ---------------------------------------------------------------------------
def _forward_kernel(x_ref, l_ref, r_ref, c_ref, o_ref):
    cin = x_ref.shape[0]
    xm = x_ref[0]
    for i in range(1, cin):                 # tiny static unroll (3 channels)
        xm = xm + x_ref[i]
    xm = xm * (1.0 / cin)                                          # (16, 16)
    t = jnp.dot(l_ref[...], xm, preferred_element_type=jnp.float32)
    o_ref[...] = (jnp.dot(t, r_ref[...], preferred_element_type=jnp.float32)
                  + c_ref[...])


# ---------------------------------------------------------------------------
# Fused loss kernel: BBCEWithLogitLoss + _iou_loss, one read of pred/gt,
# two scalar SMEM outputs. Inputs are (B*C, R, 128) sublane/lane-dense.
# TODO(synk): at production mask sizes, add a grid over the R axis with
# partial-sum accumulation (and vmem_limit_bytes / parallel semantics for
# v5e/v7x); a single block is optimal at this toy size.
# ---------------------------------------------------------------------------
def _losses_kernel(pred_ref, gt_ref, bbce_ref, iou_ref):
    eps = 1e-10
    x = pred_ref[...]
    g = gt_ref[...]
    # stable softplus pieces, shared between BCE terms and sigmoid
    log1pexp = jnp.log(1.0 + jnp.exp(-jnp.abs(x)))
    sp_neg = jnp.maximum(-x, 0.0) + log1pexp      # -log(sigmoid(x))
    sp_pos = jnp.maximum(x, 0.0) + log1pexp       # -log(1 - sigmoid(x))

    count_pos = jnp.sum(g) + eps
    count_neg = jnp.sum(1.0 - g)
    ratio = count_neg / count_pos
    w_neg = count_pos / (count_pos + count_neg)
    n_elem = x.shape[0] * x.shape[1] * x.shape[2]
    # ratio*g*sp_neg + (1-g)*sp_pos, folded to save one multiply per element
    per = g * (ratio * sp_neg - sp_pos) + sp_pos
    bbce_ref[0, 0] = w_neg * (jnp.sum(per) / n_elem)

    # sigmoid reused from the softplus term (saves one EUP transcendental)
    p = jnp.exp(-sp_neg)
    inter = jnp.sum(jnp.sum(p * g, axis=2, keepdims=True), axis=1,
                    keepdims=True)                              # (BC,1,1)
    tot = jnp.sum(jnp.sum(p + g, axis=2, keepdims=True), axis=1,
                  keepdims=True)
    union = tot - inter                       # > 0 since sigmoid(x) > 0
    iou = 1.0 - inter / union                 # no eps: matches the reference
    iou_ref[0, 0] = jnp.mean(iou)


def _losses_impl(pred, gt):
    b, c, h, w = pred.shape
    hw = h * w
    if hw % 128 == 0:                         # sublane/lane-dense layout
        shape3 = (b * c, hw // 128, 128)
    else:
        shape3 = (b * c, h, w)
    pred3 = pred.astype(jnp.float32).reshape(shape3)
    gt3 = gt.astype(jnp.float32).reshape(shape3)
    bbce, iou = pl.pallas_call(
        _losses_kernel,
        out_shape=(jax.ShapeDtypeStruct((1, 1), jnp.float32),
                   jax.ShapeDtypeStruct((1, 1), jnp.float32)),
        out_specs=(pl.BlockSpec(memory_space=pltpu.MemorySpace.SMEM),
                   pl.BlockSpec(memory_space=pltpu.MemorySpace.SMEM)),
    )(pred3, gt3)
    return bbce[0, 0], iou[0, 0]              # folded into the jitted graph


sam_losses = jax.jit(_losses_impl)            # returns (bbce, iou) from 1 launch


def bbce_with_logit_loss(pred, gt):
    # NOTE: call sam_losses(pred, gt) once if you need BOTH losses.
    return sam_losses(pred, gt)[0]


def iou_loss(pred, gt):
    return sam_losses(pred, gt)[1]


# ---------------------------------------------------------------------------
# Generic separable resize (API parity for postprocess_masks; NOT on the
# fused forward path). Stage 1 is one lane-dense matmul over all channels.
# TODO(synk): at production B*C, tile the channel axis with a "parallel" grid.
# ---------------------------------------------------------------------------
def _sep_resize_kernel(a_ref, bt_ref, x_ref, o_ref):
    n, hin, win = x_ref.shape
    xw = jnp.dot(x_ref[...].reshape(n * hin, win), bt_ref[...],
                 preferred_element_type=jnp.float32)       # (N*Hin, Wout)
    a = a_ref[...]
    for i in range(n):
        o_ref[i] = jnp.dot(a, xw[i * hin:(i + 1) * hin, :],
                           preferred_element_type=jnp.float32)


def _sep_resize(x, a, bt):
    """out[b,c] = a @ x[b,c] @ bt  with a:(Hout,Hin), bt:(Win,Wout)."""
    b, c, hin, win = x.shape
    hout, wout = a.shape[0], bt.shape[1]
    out = pl.pallas_call(
        _sep_resize_kernel,
        out_shape=jax.ShapeDtypeStruct((b * c, hout, wout), jnp.float32),
    )(a, bt, x.reshape(b * c, hin, win))
    return out.reshape(b, c, hout, wout)


# ---------------------------------------------------------------------------
# SAM wrapper (parameters initialized deterministically in-script)
# ---------------------------------------------------------------------------
class SAMPallas:
    def __init__(self, inp_size=INP_SIZE, patch_size=PATCH_SIZE,
                 prompt_embed_dim=PROMPT_EMBED_DIM, key=None):
        if key is None:
            key = jax.random.PRNGKey(0)
        k1, k2 = jax.random.split(key)
        self.inp_size = inp_size
        self.img_size = inp_size                 # image_encoder.img_size
        self.prompt_embed_dim = prompt_embed_dim
        self.image_embedding_size = inp_size // patch_size
        S, E, F = self.image_embedding_size, prompt_embed_dim, prompt_embed_dim // 2
        low_res = 4 * S

        # PositionEmbeddingRandom buffer: scale * randn((2, F)), scale = 1.0
        self.pe_gaussian = jax.random.normal(k1, (2, F), dtype=jnp.float32)
        # nn.Embedding(1, prompt_embed_dim).weight
        self.no_mask_embed = jax.random.normal(k2, (1, E), dtype=jnp.float32)

        # ---- parameter-only constants, one-time NumPy fold (review P0) ----
        gauss = np.asarray(self.pe_gaussian, dtype=np.float64)      # (2, F)
        nomask = np.asarray(self.no_mask_embed, dtype=np.float64)   # (1, E)
        ys = (np.arange(S, dtype=np.float64) + 0.5) / S
        xs = (np.arange(S, dtype=np.float64) + 0.5) / S
        xg, yg = np.meshgrid(xs, ys)                      # xg varies along W
        coords = np.stack([xg, yg], axis=-1)              # (S, S, 2)
        proj = 2.0 * math.pi * ((2.0 * coords - 1.0) @ gauss)       # (S, S, F)
        pe = np.concatenate([np.sin(proj), np.cos(proj)], axis=-1)  # (S, S, E)
        self.image_pe = jnp.asarray(
            pe.transpose(2, 0, 1)[None].astype(np.float32))         # (1,E,S,S)
        dense = np.broadcast_to(nomask.reshape(1, E, 1, 1), (1, E, S, S))
        self.dense_embeddings = jnp.asarray(dense.astype(np.float32))
        # decoder stand-in interaction term (constant, S x S)
        interaction = (pe * nomask.reshape(1, 1, E)).sum(-1) / E    # (S, S)

        # ---- precomposed forward chain  out = L @ mean(x) @ R + C ----------
        a8 = _bilinear_matrix(S, inp_size).astype(np.float64)       # 16 -> 8
        a32 = _bilinear_matrix(low_res, S).astype(np.float64)       # 8 -> 32
        # postprocess_masks: resize low->img_size, crop[:inp,:inp], resize->inp
        a1 = _bilinear_matrix(self.img_size, low_res)[:inp_size, :].astype(np.float64)
        b1 = _bilinear_matrix(self.img_size, low_res)[:inp_size, :].astype(np.float64)
        a2 = _bilinear_matrix(inp_size, inp_size).astype(np.float64)
        b2 = _bilinear_matrix(inp_size, inp_size).astype(np.float64)
        a_pp = a2 @ a1                                    # (inp, low)
        bt_pp = (b2 @ b1).T                               # (low, inp)
        L = a_pp @ a32 @ a8                               # (inp, inp)
        R = a8.T @ a32.T @ bt_pp                          # (inp, inp)
        C = a_pp @ a32 @ interaction @ a32.T @ bt_pp      # (inp, inp)
        self._L = jnp.asarray(L.astype(np.float32))
        self._R = jnp.asarray(R.astype(np.float32))
        self._C = jnp.asarray(C.astype(np.float32))

        self._pp_cache = {}                               # postprocess matrices

        # single jitted graphs (review: one jit around forward (+ losses))
        self._forward_jit = jax.jit(self._forward_impl)
        self._fwd_loss_jit = jax.jit(self._forward_and_losses_impl)

    # -- API parity: returns the cached dense positional encoding ------------
    def get_dense_pe(self):
        return self.image_pe

    # -- postprocess_masks (kept for API parity; forward uses the fused path) -
    def _postprocess_mats(self, hl, wl, input_size, original_size):
        key = (hl, wl, input_size, original_size)
        if key not in self._pp_cache:
            a1 = _bilinear_matrix(self.img_size, hl)[:input_size, :]
            b1 = _bilinear_matrix(self.img_size, wl)[:input_size, :]
            a2 = _bilinear_matrix(original_size, input_size)
            b2 = _bilinear_matrix(original_size, input_size)
            a_tot = (a2 @ a1).astype(np.float32)          # (orig, Hl)
            bt_tot = (b2 @ b1).T.astype(np.float32)       # (Wl, orig)
            self._pp_cache[key] = (jnp.asarray(a_tot), jnp.asarray(bt_tot))
        return self._pp_cache[key]

    def postprocess_masks(self, masks, input_size, original_size):
        a_tot, bt_tot = self._postprocess_mats(
            masks.shape[2], masks.shape[3], input_size, original_size)
        return _sep_resize(masks, a_tot, bt_tot)

    # -- forward: ONE Pallas launch (decoder stand-in + postprocess fused) ----
    def _forward_impl(self, x):
        bs = 1
        # sparse prompt embeddings: empty (bs, 0, E)  (kept for fidelity)
        _sparse_embeddings = jnp.zeros((bs, 0, self.prompt_embed_dim), jnp.float32)
        # dense_embeddings / image_pe are cached constants — no launches.
        # TODO(synk): ImageEncoderViT / MaskDecoder / TwoWayTransformer are not
        # defined in the provided source; deterministic linear stand-in below.
        x3 = x[0].astype(jnp.float32)                     # (3, H, W)
        out = pl.pallas_call(
            _forward_kernel,
            out_shape=jax.ShapeDtypeStruct((self.inp_size, self.inp_size),
                                           jnp.float32),
        )(x3, self._L, self._R, self._C)
        return out.reshape(1, 1, self.inp_size, self.inp_size)

    def _forward_and_losses_impl(self, x, gt):
        masks = self._forward_impl(x)
        bbce, iou = _losses_impl(masks, gt)
        return masks, bbce, iou

    def forward(self, x):
        masks = self._forward_jit(x)
        self.pred_mask = masks
        return masks                                      # (1,1,H,W)

    def infer(self, x):
        return self.forward(x)

    def forward_with_losses(self, x, gt):
        """Single jitted graph: fused forward kernel + fused loss kernel."""
        masks, bbce, iou = self._fwd_loss_jit(x, gt)
        self.pred_mask = masks
        return masks, bbce, iou


if __name__ == "__main__":
    key = jax.random.PRNGKey(0)
    k_param, k_in, k_gt = jax.random.split(key, 3)

    model = SAMPallas(key=k_param)
    x = jax.random.normal(k_in, (1, 3, INP_SIZE, INP_SIZE), dtype=jnp.float32)
    gt_mask = (jax.random.uniform(k_gt, (1, 1, INP_SIZE, INP_SIZE)) > 0.5
               ).astype(jnp.float32)

    # one jitted graph, two Pallas launches total (forward + fused losses)
    pred_mask, loss_bbce, loss_iou = model.forward_with_losses(x, gt_mask)

    jax.block_until_ready((pred_mask, loss_bbce, loss_iou))
    assert pred_mask.shape == (1, 1, INP_SIZE, INP_SIZE)
    assert bool(jnp.isfinite(loss_bbce)) and bool(jnp.isfinite(loss_iou))
    print("KERNEL_OK")
</pallas_src>

<mosaic_0001>
module attributes {stable_mosaic.version = 11 : i64} {
  func.func @_forward_kernel(%arg0: memref<3x16x16xf32, #tpu.memory_space<vmem>>, %arg1: memref<16x16xf32, #tpu.memory_space<vmem>>, %arg2: memref<16x16xf32, #tpu.memory_space<vmem>>, %arg3: memref<16x16xf32, #tpu.memory_space<vmem>>, %arg4: memref<16x16xf32, #tpu.memory_space<vmem>>) attributes {dimension_semantics = [], scalar_prefetch = 0 : i64, scratch_operands = 0 : i64, tpu.core_type = #tpu.core_type<tc>} {
    %c0 = arith.constant 0 : index
    %c0_0 = arith.constant 0 : index
    %c0_1 = arith.constant 0 : index
    %0 = vector.load %arg0[%c0, %c0_0, %c0_1] : memref<3x16x16xf32, #tpu.memory_space<vmem>>, vector<1x16x16xf32>
    %1 = vector.shape_cast %0 : vector<1x16x16xf32> to vector<16x16xf32>
    %c1 = arith.constant 1 : index
    %c0_2 = arith.constant 0 : index
    %c0_3 = arith.constant 0 : index
    %2 = vector.load %arg0[%c1, %c0_2, %c0_3] : memref<3x16x16xf32, #tpu.memory_space<vmem>>, vector<1x16x16xf32>
    %3 = vector.shape_cast %2 : vector<1x16x16xf32> to vector<16x16xf32>
    %4 = arith.addf %1, %3 : vector<16x16xf32>
    %c2 = arith.constant 2 : index
    %c0_4 = arith.constant 0 : index
    %c0_5 = arith.constant 0 : index
    %5 = vector.load %arg0[%c2, %c0_4, %c0_5] : memref<3x16x16xf32, #tpu.memory_space<vmem>>, vector<1x16x16xf32>
    %6 = vector.shape_cast %5 : vector<1x16x16xf32> to vector<16x16xf32>
    %7 = arith.addf %4, %6 : vector<16x16xf32>
    %cst = arith.constant 0.333333343 : f32
    %8 = vector.broadcast %cst : f32 to vector<16x16xf32>
    %9 = arith.mulf %7, %8 : vector<16x16xf32>
    %c0_6 = arith.constant 0 : index
    %c0_7 = arith.constant 0 : index
    %10 = vector.load %arg1[%c0_6, %c0_7] : memref<16x16xf32, #tpu.memory_space<vmem>>, vector<16x16xf32>
    %cst_8 = arith.constant dense<0.000000e+00> : vector<16x16xf32>
    %11 = tpu.matmul %10, %9, %cst_8 {dimension_numbers = #tpu.dot_dimension_numbers<[1], [0], [0], [1], [0, 0, 1, 1], [], []>} : vector<16x16xf32>, vector<16x16xf32>, vector<16x16xf32> -> vector<16x16xf32>
    %c0_9 = arith.constant 0 : index
    %c0_10 = arith.constant 0 : index
    %12 = vector.load %arg2[%c0_9, %c0_10] : memref<16x16xf32, #tpu.memory_space<vmem>>, vector<16x16xf32>
    %cst_11 = arith.constant dense<0.000000e+00> : vector<16x16xf32>
    %13 = tpu.matmul %11, %12, %cst_11 {dimension_numbers = #tpu.dot_dimension_numbers<[1], [0], [0], [1], [0, 0, 1, 1], [], []>} : vector<16x16xf32>, vector<16x16xf32>, vector<16x16xf32> -> vector<16x16xf32>
    %c0_12 = arith.constant 0 : index
    %c0_13 = arith.constant 0 : index
    %14 = vector.load %arg3[%c0_12, %c0_13] : memref<16x16xf32, #tpu.memory_space<vmem>>, vector<16x16xf32>
    %15 = arith.addf %13, %14 : vector<16x16xf32>
    %c0_14 = arith.constant 0 : index
    %c0_15 = arith.constant 0 : index
    %16 = vector.load %arg4[%c0_14, %c0_15] : memref<16x16xf32, #tpu.memory_space<vmem>>, vector<16x16xf32>
    tpu.vector_store %arg4[%c0_14, %c0_15], %15 {strides = array<i32>} : memref<16x16xf32, #tpu.memory_space<vmem>>, vector<16x16xf32>,
    return
  }
}

module attributes {stable_mosaic.version = 11 : i64} {
  func.func @_losses_kernel(%arg0: memref<1x2x128xf32, #tpu.memory_space<vmem>>, %arg1: memref<1x2x128xf32, #tpu.memory_space<vmem>>, %arg2: memref<1x1xf32, #tpu.memory_space<smem>>, %arg3: memref<1x1xf32, #tpu.memory_space<smem>>) attributes {dimension_semantics = [], scalar_prefetch = 0 : i64, scratch_operands = 0 : i64, tpu.core_type = #tpu.core_type<tc>} {
    %c0 = arith.constant 0 : index
    %c0_0 = arith.constant 0 : index
    %c0_1 = arith.constant 0 : index
    %0 = vector.load %arg0[%c0, %c0_0, %c0_1] : memref<1x2x128xf32, #tpu.memory_space<vmem>>, vector<1x2x128xf32>
    %c0_2 = arith.constant 0 : index
    %c0_3 = arith.constant 0 : index
    %c0_4 = arith.constant 0 : index
    %1 = vector.load %arg1[%c0_2, %c0_3, %c0_4] : memref<1x2x128xf32, #tpu.memory_space<vmem>>, vector<1x2x128xf32>
    %2 = math.absf %0 : vector<1x2x128xf32>
    %cst = arith.constant 0.000000e+00 : f32
    %3 = vector.broadcast %cst : f32 to vector<1x2x128xf32>
    %4 = arith.subf %3, %2 : vector<1x2x128xf32>
    %5 = math.exp %4 : vector<1x2x128xf32>
    %cst_5 = arith.constant 1.000000e+00 : f32
    %6 = vector.broadcast %cst_5 : f32 to vector<1x2x128xf32>
    %7 = arith.addf %6, %5 : vector<1x2x128xf32>
    %8 = math.log %7 : vector<1x2x128xf32>
    %cst_6 = arith.constant 0.000000e+00 : f32
    %9 = vector.broadcast %cst_6 : f32 to vector<1x2x128xf32>
    %10 = arith.subf %9, %0 : vector<1x2x128xf32>
    %cst_7 = arith.constant 0.000000e+00 : f32
    %11 = vector.broadcast %cst_7 : f32 to vector<1x2x128xf32>
    %12 = arith.maximumf %10, %11 : vector<1x2x128xf32>
    %13 = arith.addf %12, %8 : vector<1x2x128xf32>
    %cst_8 = arith.constant 0.000000e+00 : f32
    %14 = vector.broadcast %cst_8 : f32 to vector<1x2x128xf32>
    %15 = arith.maximumf %0, %14 : vector<1x2x128xf32>
    %16 = arith.addf %15, %8 : vector<1x2x128xf32>
    %17 = vector.shape_cast %1 : vector<1x2x128xf32> to vector<1x1x2x128xf32>
    %cst_9 = arith.constant dense<0.000000e+00> : vector<1xf32>
    %18 = vector.multi_reduction <add>, %17, %cst_9 [1, 2, 3] : vector<1x1x2x128xf32> to vector<1xf32>
    %19 = vector.shape_cast %18 : vector<1xf32> to vector<1x1x1x1xf32>
    %20 = vector.extract %19[0, 0, 0, 0] : f32 from vector<1x1x1x1xf32>
    %cst_10 = arith.constant 1.000000e-10 : f32
    %21 = arith.addf %20, %cst_10 : f32
    %cst_11 = arith.constant 1.000000e+00 : f32
    %22 = vector.broadcast %cst_11 : f32 to vector<1x2x128xf32>
    %23 = arith.subf %22, %1 : vector<1x2x128xf32>
    %24 = vector.shape_cast %23 : vector<1x2x128xf32> to vector<1x1x2x128xf32>
    %cst_12 = arith.constant dense<0.000000e+00> : vector<1xf32>
    %25 = vector.multi_reduction <add>, %24, %cst_12 [1, 2, 3] : vector<1x1x2x128xf32> to vector<1xf32>
    %26 = vector.shape_cast %25 : vector<1xf32> to vector<1x1x1x1xf32>
    %27 = vector.extract %26[0, 0, 0, 0] : f32 from vector<1x1x1x1xf32>
    %28 = arith.divf %27, %21 : f32
    %29 = arith.addf %21, %27 : f32
    %30 = arith.divf %21, %29 : f32
    %31 = vector.broadcast %28 : f32 to vector<1x2x128xf32>
    %32 = arith.mulf %31, %13 : vector<1x2x128xf32>
    %33 = arith.subf %32, %16 : vector<1x2x128xf32>
    %34 = arith.mulf %1, %33 : vector<1x2x128xf32>
    %35 = arith.addf %34, %16 : vector<1x2x128xf32>
    %36 = vector.shape_cast %35 : vector<1x2x128xf32> to vector<1x1x2x128xf32>
    %cst_13 = arith.constant dense<0.000000e+00> : vector<1xf32>
    %37 = vector.multi_reduction <add>, %36, %cst_13 [1, 2, 3] : vector<1x1x2x128xf32> to vector<1xf32>
    %38 = vector.shape_cast %37 : vector<1xf32> to vector<1x1x1x1xf32>
    %39 = vector.extract %38[0, 0, 0, 0] : f32 from vector<1x1x1x1xf32>
    %cst_14 = arith.constant 2.560000e+02 : f32
    %40 = arith.divf %39, %cst_14 : f32
    %41 = arith.mulf %30, %40 : f32
    %c0_15 = arith.constant 0 : index
    %c0_16 = arith.constant 0 : index
    %42 = memref.load %arg2[%c0_15, %c0_16] : memref<1x1xf32, #tpu.memory_space<smem>>
    memref.store %41, %arg2[%c0_15, %c0_16] : memref<1x1xf32, #tpu.memory_space<smem>>
    %cst_17 = arith.constant 0.000000e+00 : f32
    %43 = vector.broadcast %cst_17 : f32 to vector<1x2x128xf32>
    %44 = arith.subf %43, %13 : vector<1x2x128xf32>
    %45 = math.exp %44 : vector<1x2x128xf32>
    %46 = arith.mulf %45, %1 : vector<1x2x128xf32>
    %cst_18 = arith.constant dense<0.000000e+00> : vector<1x2xf32>
    %47 = vector.multi_reduction <add>, %46, %cst_18 [2] : vector<1x2x128xf32> to vector<1x2xf32>
    %48 = vector.shape_cast %47 : vector<1x2xf32> to vector<1x2x1xf32>
    %cst_19 = arith.constant dense<0.000000e+00> : vector<1x1xf32>
    %49 = vector.multi_reduction <add>, %48, %cst_19 [1] : vector<1x2x1xf32> to vector<1x1xf32>
    %50 = vector.shape_cast %49 : vector<1x1xf32> to vector<1x1x1xf32>
    %51 = arith.addf %45, %1 : vector<1x2x128xf32>
    %cst_20 = arith.constant dense<0.000000e+00> : vector<1x2xf32>
    %52 = vector.multi_reduction <add>, %51, %cst_20 [2] : vector<1x2x128xf32> to vector<1x2xf32>
    %53 = vector.shape_cast %52 : vector<1x2xf32> to vector<1x2x1xf32>
    %cst_21 = arith.constant dense<0.000000e+00> : vector<1x1xf32>
    %54 = vector.multi_reduction <add>, %53, %cst_21 [1] : vector<1x2x1xf32> to vector<1x1xf32>
    %55 = vector.shape_cast %54 : vector<1x1xf32> to vector<1x1x1xf32>
    %56 = arith.subf %55, %50 : vector<1x1x1xf32>
    %57 = arith.divf %50, %56 : vector<1x1x1xf32>
    %cst_22 = arith.constant 1.000000e+00 : f32
    %58 = vector.broadcast %cst_22 : f32 to vector<1x1x1xf32>
    %59 = arith.subf %58, %57 : vector<1x1x1xf32>
    %60 = vector.shape_cast %59 : vector<1x1x1xf32> to vector<1x1x1x1xf32>
    %cst_23 = arith.constant dense<0.000000e+00> : vector<1xf32>
    %61 = vector.multi_reduction <add>, %60, %cst_23 [1, 2, 3] : vector<1x1x1x1xf32> to vector<1xf32>
    %62 = vector.shape_cast %61 : vector<1xf32> to vector<1x1x1x1xf32>
    %63 = vector.extract %62[0, 0, 0, 0] : f32 from vector<1x1x1x1xf32>
    %cst_24 = arith.constant 1.000000e+00 : f32
    %64 = arith.divf %63, %cst_24 : f32
    %c0_25 = arith.constant 0 : index
    %c0_26 = arith.constant 0 : index
    %65 = memref.load %arg3[%c0_25, %c0_26] : memref<1x1xf32, #tpu.memory_space<smem>>
    memref.store %64, %arg3[%c0_25, %c0_26] : memref<1x1xf32, #tpu.memory_space<smem>>
    return
  }
}

</mosaic_0001>

<bundles_post_ra>
// kernel: _forward_and_losses_impl.3
= control target key start
LH: loop header
LB: loop body
LE: loop exit
PB: predicated region body
PF: predicated region fallthrough
CT: control target
= control target key end

     0   :  { %9 = vsyncpa [#allocation3], 0  ;;  %vm29_vm0 = vcmask 1041408   ;;  %s239_s0 = inlined_call_operand.vmem [shape: f32[1,2,128], index: 0, kind: input, shape index: {}]   ;;  %s240_s1 = inlined_call_operand.vmem [shape: f32[1,2,128], index: 1, kind: input, shape index: {}]   ;;  %s241_s2 = inlined_call_operand.hbm [shape: f32[1,1], index: 2, kind: output, shape index: {0}]   ;;  %s242_s3 = inlined_call_operand.hbm [shape: f32[1,1], index: 3, kind: output, shape index: {1}]  }
   0x1   :  { %v211_v0 = vld [vmem:[%s240_s1] sm:$0x3] }
   0x2   :  { %10 = vsyncpa [#allocation5], 0  ;;  %v30_v1 = vsel %vm29_vm0, %v211_v0, 0.0  ;;  %v41_v2 = vsub.f32 1.0, %v211_v0  ;;  %v15_v4 = vld [vmem:[%s239_s0] sm:$0x3] }
   0x3   :  { %31 = vadd.xlane.f32.xlu0 %v30_v1  ;;  %v17_v5 = vand.u32 2147483647, %v15_v4  ;;  %v24_v10 = vsub.f32 0.0, %v15_v4  ;;  %v27_v17 = vmax.f32 %v15_v4, 0.0  ;;  %s186_s26 = smov [#allocation4]   ;;  %s187_s29 = smov [#allocation2]  }
   0x4   :  { %v42_v3 = vsel %vm29_vm0, %v41_v2, 0.0 }
   0x5   :  { %v18_v6 = vsub.f32 0.0, %v17_v5  ;;  %v25_v13 = vmax.f32 %v24_v10, 0.0 }
   0x7   :  { %43 = vadd.xlane.f32.xlu0 %v42_v3  ;;  %v19_v7 = vmul.f32 1.442695, %v18_v6 }
   0x9   :  { %154 = vpow2.f32 %v19_v7 }
  0x16   :  { %v155_v8 = vpop.eup %154 }
  0x17   :  { %v21_v9 = vadd.f32 1.0, %v155_v8 }
  0x19   :  { %156 = vlog2.f32 %v21_v9 }
  0x26   :  { %v157_v11 = vpop.eup %156 }
  0x27   :  { %v23_v12 = vmul.f32 0.6931472, %v157_v11 }
  0x29   :  { %v26_v14 = vadd.f32 %v25_v13, %v23_v12  ;;  %v28_v18 = vadd.f32 %v27_v17, %v23_v12 }
  0x2b   :  { %v82_v15 = vsub.f32 0.0, %v26_v14 }
  0x2d   :  { %v83_v16 = vmul.f32 1.442695, %v82_v15 }
  0x2f   :  { %158 = vpow2.f32 %v83_v16 }
  0x3c   :  { %v159_v19 = vpop.eup %158 }
  0x3d   :  { %v85_v20 = vmul.f32 %v159_v19, %v211_v0  ;;  %v96_v21 = vadd.f32 %v159_v19, %v211_v0 }
  0x3f   :  { %v86_v22 = vsel %vm29_vm0, %v85_v20, 0.0  ;;  %v97_v23 = vsel %vm29_vm0, %v96_v21, 0.0 }
  0x40   :  { %87 = vadd.xlane.f32.xlu1 %v86_v22 }
  0x44   :  { %98 = vadd.xlane.f32.xlu1 %v97_v23 }
  0x8c   :  { %v32_v24 = vpop.xlane.xlu0 %31 }
  0x8d   :  { %v33_v25 = vrot.slane %v32_v24, 4 }
  0x8f   :  { %v34_v26 = vadd.f32 %v33_v25, %v32_v24 }
  0x90   :  { %v44_v27 = vpop.xlane.xlu0 %43 }
  0x91   :  { %v35_v28 = vrot.slane %v34_v26, 2  ;;  %v45_v29 = vrot.slane %v44_v27, 4 }
  0x93   :  { %v46_v30 = vadd.f32 %v45_v29, %v44_v27  ;;  %v36_v31 = vadd.f32 %v35_v28, %v34_v26 }
  0x95   :  { %v47_v32 = vrot.slane %v46_v30, 2  ;;  %v37_v33 = vrot.slane %v36_v31, 1 }
  0x97   :  { %v38_v34 = vadd.f32 %v37_v33, %v36_v31  ;;  %v48_v35 = vadd.f32 %v47_v32, %v46_v30 }
  0x99   :  { %140 = vpush %v38_v34  ;;  %v49_v36 = vrot.slane %v48_v35, 1 }
  0x9b   :  { %v50_v37 = vadd.f32 %v49_v36, %v48_v35 }
  0x9d   :  { %142 = vpush %v50_v37 }
  0xc9   :  { %v88_v48 = vpop.xlane.xlu1 %87 }
  0xca   :  { %s141_s0 = spop %140  ;;  %v89_v50 = vsel %vm29_vm0, %v88_v48, 0.0 }
  0xcb   :  { %s224_s1 = sadd.f32 1e-10, %s141_s0  ;;  %v90_v52 = vrot.slane %v89_v50, 4 }
  0xcd   :  { %v52_v38 = vstv %s224_s1  ;;  %v99_v49 = vpop.xlane.xlu1 %98  ;;  %v91_v54 = vadd.f32 %v90_v52, %v89_v50 }
  0xce   :  { %160 = vrcp.f32 %v52_v38  ;;  %s143_s16 = spop %142  ;;  %v100_v51 = vsel %vm29_vm0, %v99_v49, 0.0 }
  0xcf   :  { %s56_s17 = sadd.f32 %s143_s16, %s224_s1  ;;  %v101_v53 = vrot.slane %v100_v51, 4  ;;  %v92_v56 = vrot.slane %v91_v54, 2 }
  0xd1   :  { %v57_v39 = vstv %s56_s17  ;;  %v102_v55 = vadd.f32 %v101_v53, %v100_v51  ;;  %v93_v58 = vadd.f32 %v92_v56, %v91_v54 }
  0xd2   :  { %162 = vrcp.f32 %v57_v39 }
  0xd3   :  { %v103_v57 = vrot.slane %v102_v55, 2  ;;  %v94_v60 = vrot.slane %v93_v58, 1 }
  0xd5   :  { %v104_v59 = vadd.f32 %v103_v57, %v102_v55  ;;  %v95_v63 = vadd.f32 %v94_v60, %v93_v58 }
  0xd7   :  { %v105_v61 = vrot.slane %v104_v59, 1 }
  0xd9   :  { %v106_v62 = vadd.f32 %v105_v61, %v104_v59 }
  0xdb   :  { %v161_v40 = vpop.eup %160 }
  0xdc   :  { %144 = vpush %v161_v40 }
  0xdf   :  { %v163_v41 = vpop.eup %162 }
  0xe0   :  { %146 = vpush %v163_v41 }
 0x10d   :  { %s145_s18 = spop %144 }
 0x10e   :  { %s55_s19 = smul.f32 %s145_s18, %s143_s16 }
 0x110   :  { %v61_v42 = vstv %s55_s19 }
 0x111   :  { %v62_v43 = vmul.f32 %v61_v42, %v26_v14  ;;  %s147_s20 = spop %146 }
 0x112   :  { %s60_s21 = smul.f32 %s147_s20, %s224_s1 }
 0x113   :  { %v63_v44 = vsub.f32 %v62_v43, %v28_v18 }
 0x115   :  { %v64_v45 = vmul.f32 %v63_v44, %v211_v0  ;;  %v107_v0 = vsub.f32 %v106_v62, %v95_v63 }
 0x117   :  { %v65_v46 = vadd.f32 %v64_v45, %v28_v18  ;;  %164 = vrcp.f32 %v107_v0 }
 0x119   :  { %v66_v47 = vsel %vm29_vm0, %v65_v46, 0.0 }
 0x11a   :  { %67 = vadd.xlane.f32.xlu0 %v66_v47 }
 0x124   :  { %v165_v4 = vpop.eup %164 }
 0x125   :  { %v109_v7 = vmul.f32 %v165_v4, %v95_v63 }
 0x127   :  { %v110_v10 = vsub.f32 1.0, %v109_v7 }
 0x1a3   :  { %v68_v1 = vpop.xlane.xlu0 %67 }
 0x1a4   :  { %v69_v2 = vrot.slane %v68_v1, 4 }
 0x1a6   :  { %v70_v3 = vadd.f32 %v69_v2, %v68_v1 }
 0x1a8   :  { %v71_v5 = vrot.slane %v70_v3, 2 }
 0x1aa   :  { %v72_v6 = vadd.f32 %v71_v5, %v70_v3 }
 0x1ac   :  { %v73_v8 = vrot.slane %v72_v6, 1 }
 0x1ae   :  { %v74_v9 = vadd.f32 %v73_v8, %v72_v6 }
 0x1b0   :  { %148 = vpush %v74_v9 }
 0x1b1   :  { %150 = vpush %v110_v10 }
 0x1e1   :  { %s149_s22 = spop %148 }
 0x1e2   :  { %s78_s23 = smul.f32 0.00390625, %s149_s22  ;;  %s151_s24 = spop %150 }
 0x1e3   :  { %114 = sst [smem:[#allocation4]] %s151_s24 }
 0x1e4   :  { %s79_s25 = smul.f32 %s78_s23, %s60_s21 }
 0x1e5   :  { %130 = dma.smem_to_hbm %s186_s26, 16, %s242_s3, [#allocation5]  }
 0x1e6   :  { %81 = sst [smem:[#allocation2]] %s79_s25 }
 0x1e7   :  { %122 = dma.smem_to_hbm %s187_s29, 16, %s241_s2, [#allocation3]  }
 0x1e8   :  { %182 = dma.done.wait [#allocation3], 16  }
 0x1e9   :  { %183 = vsyncadd [#allocation3], 4294967280 }
 0x1ea   :  { %184 = dma.done.wait [#allocation5], 16  }
 0x1eb   :  { %185 = vsyncadd [#allocation5], 4294967280 }
 0x1ec   :  { %137 = sfence }
 0x1ed   :  { %138 = vsyncpa [#allocation3], 1 }
 0x1ee   :  { %139 = vsyncpa [#allocation5], 1 }

// kernel: _forward_and_losses_impl.2
= control target key start
LH: loop header
LB: loop body
LE: loop exit
PB: predicated region body
PF: predicated region fallthrough
CT: control target
= control target key end

     0   :  { %9 = vsyncpa [#allocation3], 0  ;;  %s401_s0 = inlined_call_operand.hbm [shape: f32[3,16,16], index: 0, kind: input, shape index: {}]   ;;  %s402_s1 = inlined_call_operand.hbm [shape: f32[16,16], index: 1, kind: input, shape index: {}]   ;;  %s403_s2 = inlined_call_operand.hbm [shape: f32[16,16], index: 2, kind: input, shape index: {}]   ;;  %s404_s3 = inlined_call_operand.vmem [shape: f32[16,16], index: 3, kind: input, shape index: {}]   ;;  %s405_s4 = inlined_call_operand.vmem [shape: f32[16,16], index: 4, kind: output, shape index: {}]  }
   0x1   :  { %10 = vsyncpa [#allocation5], 0  ;;  %s344_s15 = smov [#allocation4]   ;;  %s345_s17 = smov [#allocation2]  }
   0x2   :  { %s28_s16 = sshll.u32 %s344_s15, 4  ;;  %s16_s18 = sshll.u32 %s345_s17, 4  ;;  %s29_s16 = int_to_ptr.vmem [resolvable:$true] %s28_s16  ;;  %s17_s18 = int_to_ptr.vmem [resolvable:$true] %s16_s18 }
   0x3   :  { %s288_s19 = scalar_lea.vmem %s29_s16, 256  ;;  %p293_p1 = scmp.lt.s32.totalorder %s29_s16, %s29_s16 }
   0x4   :  { %p289_p0 = scmp.ne.s32.totalorder %s29_s16, %s288_s19  ;;  %p294_p2 = scmp.lt.s32.totalorder %s288_s19, %s288_s19 }
   0x6   :  { %p295_p3 = por %p294_p2, %p293_p1 }
   0x8   :  { %p296_p4 = pnand %p295_p3, %p289_p0 }
   0xa   :  { %299 = shalt.err (!%p296_p4)
}
   0xb   :  { %s346_s20 = smov 128   ;;  %s347_s21 = smov 8  }
   0xc   :  { %34 = dma.hbm_to_vmem [thread:$0]  %s402_s1, 256, %s29_s16, [#allocation5], %s346_s20, %s346_s20, %s347_s21  }
   0xd   :  { %s308_s24 = scalar_lea.vmem %s17_s18, 768  ;;  %p313_p6 = scmp.lt.s32.totalorder %s17_s18, %s17_s18 }
   0xe   :  { %p309_p5 = scmp.ne.s32.totalorder %s17_s18, %s308_s24  ;;  %p314_p7 = scmp.lt.s32.totalorder %s308_s24, %s308_s24 }
  0x10   :  { %p315_p8 = por %p314_p7, %p313_p6 }
  0x12   :  { %p316_p9 = pnand %p315_p8, %p309_p5 }
  0x14   :  { %319 = shalt.err (!%p316_p9)
}
  0x15   :  { %22 = dma.hbm_to_vmem [thread:$0]  %s401_s0, 768, %s17_s18, [#allocation3], %s346_s20, %s346_s20, %s347_s21  }
  0x16   :  { %s348_s27 = smov [#allocation6]  }
  0x17   :  { %s40_s28 = sshll.u32 %s348_s27, 4  ;;  %s41_s28 = int_to_ptr.vmem [resolvable:$true] %s40_s28 }
  0x18   :  { %s328_s29 = scalar_lea.vmem %s41_s28, 256  ;;  %p333_p11 = scmp.lt.s32.totalorder %s41_s28, %s41_s28 }
  0x19   :  { %p329_p10 = scmp.ne.s32.totalorder %s41_s28, %s328_s29  ;;  %p334_p12 = scmp.lt.s32.totalorder %s328_s29, %s328_s29 }
  0x1b   :  { %p335_p13 = por %p334_p12, %p333_p11 }
  0x1d   :  { %p336_p0 = pnand %p335_p13, %p329_p10 }
  0x1f   :  { %339 = shalt.err (!%p336_p0)
}
  0x20   :  { %46 = dma.hbm_to_vmem [thread:$0]  %s403_s2, 256, %s41_s28, [#allocation5], %s346_s20, %s346_s20, %s347_s21  }
  0x21   :  { %340 = dma.done.wait [#allocation3], 768  }
  0x22   :  { %341 = vsyncadd [#allocation3], 4294966528 }
  0x23   :  { %342 = dma.done.wait [#allocation5], 512  }
  0x24   :  { %343 = vsyncadd [#allocation5], 4294966784  ;;  %v59_v0 = vld [vmem:[#allocation2 + $0x8] sm:$0xff]  ;;  %v62_v1 = vld [vmem:[#allocation2 + $0x18] sm:$0xff]  ;;  %vm74_vm0 = vcmask 130048  }
  0x25   :  { %v67_v2 = vld [vmem:[#allocation2 + $0x28] sm:$0xff]  ;;  %v64_v3 = vadd.f32 %v62_v1, %v59_v0  ;;  %v58_v4 = vld [vmem:[#allocation2] sm:$0xff]  ;;  %v61_v5 = vld [vmem:[#allocation2 + $0x10] sm:$0xff] }
  0x26   :  { %v66_v6 = vld [vmem:[#allocation2 + $0x20] sm:$0xff]  ;;  %v63_v7 = vadd.f32 %v61_v5, %v58_v4  ;;  %v72_v8 = vld [vmem:[#allocation4] sm:$0xff]  ;;  %v73_v13 = vld [vmem:[#allocation4 + $0x8] sm:$0xff] }
  0x27   :  { %v69_v9 = vadd.f32 %v67_v2, %v64_v3  ;;  %265 = vmatprep.mubr.msk.f32.mxu0 %vm74_vm0, %v72_v8  ;;  %v157_v14 = vld [vmem:[#allocation6 + $0x8] sm:$0xff]  ;;  %v156_v15 = vld [vmem:[#allocation6] sm:$0xff] }
  0x28   :  { %v68_v10 = vadd.f32 %v66_v6, %v63_v7  ;;  %268 = vmatprep.subr.mxu1 %v157_v14  ;;  %v159_v18 = vld [vmem:[%s404_s3 + $0x8] sm:$0xff]  ;;  %v158_v20 = vld [vmem:[%s404_s3] sm:$0xff] }
  0x29   :  { %v71_v11 = vmul.f32 0.33333334, %v69_v9  ;;  %269 = vmatpush3.msra.mxu1 %v157_v14 }
  0x2a   :  { %v70_v12 = vmul.f32 0.33333334, %v68_v10  ;;  %270 = vmatprep.subr.mxu1 %v156_v15 }
  0x2b   :  { %261 = vmatprep.subr.mxu0 %v71_v11  ;;  %271 = vmatpush3.msra.mxu1 %v156_v15 }
  0x2c   :  { %262 = vmatpush3.msra.mxu0 %v71_v11 }
  0x2d   :  { %263 = vmatprep.subr.mxu0 %v70_v12 }
  0x2e   :  { %264 = vmatpush3.msra.mxu0 %v70_v12 }
  0x2f   :  { %266 = vmatmul.mubr.msk.f32.vlgmr.msra.gmra.mxu0 %vm74_vm0, %v73_v13 }
  0xef   :  { %v267_v16 = vpop.f32.mrf.mxu0 }
  0xf1   :  { %v147_v17 = vpop.f32.mrf.mxu0 }
  0xf2   :  { %272 = vmatprep.mubr.msk.f32.mxu1 %vm74_vm0, %v147_v17 }
  0xf3   :  { %273 = vmatmul.mubr.msk.f32.vlgmr.msra.gmra.mxu1 %vm74_vm0, %v267_v16 }
 0x1b3   :  { %v274_v19 = vpop.f32.mrf.mxu1 }
 0x1b4   :  { %v238_v21 = vadd.f32 %v274_v19, %v159_v18 }
 0x1b5   :  { %v232_v22 = vpop.f32.mrf.mxu1 }
 0x1b6   :  { %242 = vst.msk [vmem:[%s405_s4 + $0x8] sm:$0xff] %vm74_vm0, %v238_v21  ;;  %v233_v23 = vadd.f32 %v232_v22, %v158_v20 }
 0x1b8   :  { %241 = vst.msk [vmem:[%s405_s4] sm:$0xff] %vm74_vm0, %v233_v23 }
 0x1b9   :  { %247 = vsyncpa [#allocation3], 1 }
 0x1ba   :  { %248 = vsyncpa [#allocation5], 1 }

</bundles_post_ra>
